<compile_context>
chip_gen: v7x
topology: tpu7x:2x2x1
jax: 0.10.0
libtpu: 0.0.40
codegen_flags: <defaults>
</compile_context>

<pallas_src>
import jax
import jax.numpy as jnp
from jax.experimental import pallas as pl
from jax.experimental.pallas import tpu as pltpu


def _round_up(x, m):
    return ((x + m - 1) // m) * m


def _vmem_bytes():
    """Physical VMEM capacity of the local TPU generation (fallback: 64 MiB)."""
    try:
        info = pltpu.get_tpu_info()
        cap = int(getattr(info, "vmem_capacity_bytes", 0)) or (64 << 20)
    except Exception:  # query unavailable (e.g. interpret mode / CPU trace)
        cap = 64 << 20
    return cap


def classifier_kernel(x_ref, w1_ref, b1_ref, w2_ref, b2_ref, o_ref, acc_ref):
    """Fused Linear -> Tanh -> Linear on one (TM, TK) tile.

    Grid = (batch tiles, K tiles over the feature axis).  The first matmul is
    accumulated in f32 across K; tanh / bias adds run in f32 (v5e-safe); both
    matmuls feed the MXU in the streaming dtype (bf16 or f32) with f32
    accumulation via preferred_element_type.
    """
    k = pl.program_id(1)

    @pl.when(k == 0)
    def _init():
        acc_ref[...] = jnp.zeros_like(acc_ref)

    acc_ref[...] += jnp.dot(
        x_ref[...], w1_ref[...], preferred_element_type=jnp.float32
    )

    @pl.when(k == pl.num_programs(1) - 1)
    def _finalize():
        h = jnp.tanh(acc_ref[...] + b1_ref[...])          # f32 elementwise
        out = jnp.dot(
            h.astype(w2_ref.dtype), w2_ref[...],
            preferred_element_type=jnp.float32,
        ) + b2_ref[...]
        o_ref[...] = out.astype(o_ref.dtype)


def _pick_tiles(B, F, H, O, isz, budget, tm_cap=2048):
    """Largest (TM, TK) whose working set fits `budget` bytes of VMEM.

    Prefers a single K slice (TK = F, W1 resident and single-buffered); falls
    back to streaming W1 in 512/256/128-column K tiles when num_ftrs is too
    large to keep resident.
    """
    const_bytes = H * 4 + H * O * isz + O * 4            # b1, w2, b2 (1 buffer)
    per_row_fixed = H * 4 + H * (4 + isz) + O * 4 + 2 * O * 4
    # ^ f32 accumulator + tanh/cast temporaries + double-buffered output rows.

    def max_tm(tk, w1_bufs):
        fixed = const_bytes + w1_bufs * tk * H * isz
        per_row = 2 * tk * isz + per_row_fixed           # double-buffered x rows
        avail = budget - fixed
        if avail < per_row * 8:
            return 0
        return min(tm_cap, (avail // per_row) // 8 * 8)

    tm = max_tm(F, 1)                                    # single K slice
    if tm >= 8:
        return int(tm), int(F)
    for tk in (512, 256, 128):                           # stream W1 over K
        tm = max_tm(tk, 2)
        if tm >= 8:
            return int(tm), int(tk)
    raise ValueError("num_ftrs too large for the available VMEM budget")


def beta_office_forward(x, nn_output, prediction, p_t, pass_sign, params,
                        block_m=None, use_bf16=True):
    """Pallas implementation of beta_office.forward.

    nn_output / prediction / p_t / pass_sign only affect the custom backward
    of GradFunction; GradLayer is the identity in forward, so the result is
    the classifier head output unchanged.
    """
    del nn_output, prediction, p_t, pass_sign            # forward-identity
    w1, b1, w2, b2 = params
    B, F = x.shape
    H = w1.shape[1]
    O = w2.shape[1]

    compute_dtype = jnp.bfloat16 if use_bf16 else jnp.float32
    isz = jnp.dtype(compute_dtype).itemsize

    # MXU operands in the streaming dtype; biases stay f32 (added post-matmul,
    # after the f32-accumulated dot).
    x_c = x.astype(compute_dtype)
    w1_c = w1.astype(compute_dtype)
    w2_c = w2.astype(compute_dtype)
    b1_f = b1.astype(jnp.float32)
    b2_f = b2.astype(jnp.float32)

    # Generation-aware VMEM policy: size tiles under ~50% of physical VMEM and
    # tell Mosaic the real limit (v5e's 16 MiB default would otherwise bind;
    # v7x's 64 MiB must not be exceeded).
    vmem_cap = _vmem_bytes()
    budget = vmem_cap // 2
    vmem_limit = min(int(vmem_cap * 0.75), 128 << 20)

    TM, TK = _pick_tiles(B, F, H, O, isz, budget)
    if block_m is not None:
        TM = max(8, _round_up(block_m, 8))
    else:
        # Keep >= 2 batch grid steps so v7x megacore ("parallel" batch axis)
        # always has work for both TensorCores.
        if B >= 16:
            TM = min(TM, _round_up((B + 1) // 2, 8))
        TM = min(TM, _round_up(B, 8))

    # K-tiling pad (only on the rare huge-F path where W1 can't sit resident).
    F_pad = _round_up(F, TK)
    if F_pad != F:
        # TODO(synk): this pad copies x once; only taken when num_ftrs is too
        # large for resident weights, where W1 streaming dominates anyway.
        x_c = jnp.zeros((B, F_pad), compute_dtype).at[:, :F].set(x_c)
        w1_c = jnp.zeros((F_pad, H), compute_dtype).at[:F, :].set(w1_c)

    n_m = pl.cdiv(B, TM)      # partial last batch tile: pad rows hold garbage
    n_k = F_pad // TK         # but are independent and never stored past row B.

    resident = dict(pipeline_mode=pl.Buffered(1))   # constant index -> 1 buffer
    w1_mode = resident if n_k == 1 else {}

    cost = pl.CostEstimate(
        flops=2 * B * F * H + 2 * B * H * O,
        transcendentals=B * H,
        bytes_accessed=(x_c.size * isz + w1_c.size * isz + w2_c.size * isz
                        + b1_f.size * 4 + b2_f.size * 4 + B * O * 4),
    )

    return pl.pallas_call(
        classifier_kernel,
        out_shape=jax.ShapeDtypeStruct((B, O), jnp.float32),
        grid=(n_m, n_k),
        in_specs=[
            # Streamed batch x K tiles of the features.
            pl.BlockSpec((TM, TK), lambda i, k: (i, k)),
            # W1: resident (single K slice) or streamed over K.
            pl.BlockSpec((TK, H), lambda i, k: (k, 0), **w1_mode),
            # Biases / W2: constant index -> single pipeline buffer.
            pl.BlockSpec((1, H), lambda i, k: (0, 0), **resident),
            pl.BlockSpec((H, O), lambda i, k: (0, 0), **resident),
            pl.BlockSpec((1, O), lambda i, k: (0, 0), **resident),
        ],
        out_specs=pl.BlockSpec((TM, O), lambda i, k: (i, 0)),
        scratch_shapes=[pltpu.VMEM((TM, H), jnp.float32)],
        compiler_params=pltpu.CompilerParams(
            dimension_semantics=("parallel", "arbitrary"),
            vmem_limit_bytes=vmem_limit,
        ),
        cost_estimate=cost,
    )(x_c, w1_c, b1_f, w2_c, b2_f)


def init_params(key, num_ftrs):
    """Deterministic init matching nn.Linear's default uniform(-1/sqrt(in), ...)."""
    hid = num_ftrs // 2
    out = 2
    k1, k2, k3, k4 = jax.random.split(key, 4)
    bound1 = 1.0 / jnp.sqrt(jnp.float32(num_ftrs))
    bound2 = 1.0 / jnp.sqrt(jnp.float32(hid))
    w1 = jax.random.uniform(k1, (num_ftrs, hid), jnp.float32, -bound1, bound1)
    b1 = jax.random.uniform(k2, (1, hid), jnp.float32, -bound1, bound1)
    w2 = jax.random.uniform(k3, (hid, out), jnp.float32, -bound2, bound2)
    b2 = jax.random.uniform(k4, (1, out), jnp.float32, -bound2, bound2)
    return w1, b1, w2, b2


if __name__ == "__main__":
    key = jax.random.PRNGKey(0)
    k_param, k_x, k_nn, k_pred, k_pt = jax.random.split(key, 5)

    B = 20         # batch (deliberately not a multiple of the 8-row tile)
    num_ftrs = 32  # base_model.in_features

    params = init_params(k_param, num_ftrs)

    x = jax.random.normal(k_x, (B, num_ftrs), jnp.float32)
    # Auxiliary tensors used only by the custom backward (unused in forward):
    nn_output = jax.random.normal(k_nn, (B, 2), jnp.float32)
    prediction = jax.nn.softmax(jax.random.normal(k_pred, (B, 2), jnp.float32), axis=1)
    p_t = jax.random.uniform(k_pt, (B, 1), jnp.float32, 0.1, 0.9)
    pass_sign = None

    # Default perf path: bf16 streaming + f32 accumulation.  Small explicit
    # block_m forces a multi-step batch grid with a partial last tile.
    p_fast = beta_office_forward(x, nn_output, prediction, p_t, pass_sign,
                                 params, block_m=8, use_bf16=True)
    # PyTorch-exact f32 path (auto tiling, >= 2 batch grid steps).
    p_exact = beta_office_forward(x, nn_output, prediction, p_t, pass_sign,
                                  params, use_bf16=False)
    p_fast, p_exact = jax.block_until_ready((p_fast, p_exact))

    # Cross-check against a plain-JAX reference of the same forward math
    # (GradLayer / GradFunction.forward is the identity on p).
    w1, b1, w2, b2 = params
    ref = jnp.tanh(x @ w1 + b1) @ w2 + b2
    assert p_fast.shape == (B, 2) and p_exact.shape == (B, 2)
    assert jnp.allclose(p_exact, ref, atol=1e-5, rtol=1e-5)
    assert jnp.allclose(p_fast, ref, atol=3e-2, rtol=3e-2)

    print("KERNEL_OK")
</pallas_src>

<mosaic_0001>
module attributes {stable_mosaic.version = 11 : i64} {
  func.func @classifier_kernel(%arg0: i32, %arg1: i32, %arg2: memref<8x32xbf16, #tpu.memory_space<vmem>>, %arg3: memref<32x16xbf16, #tpu.memory_space<vmem>>, %arg4: memref<1x16xf32, #tpu.memory_space<vmem>>, %arg5: memref<16x2xbf16, #tpu.memory_space<vmem>>, %arg6: memref<1x2xf32, #tpu.memory_space<vmem>>, %arg7: memref<8x2xf32, #tpu.memory_space<vmem>>, %arg8: memref<8x16xf32, #tpu.memory_space<vmem>>) attributes {dimension_semantics = [#tpu.dimension_semantics<parallel>, #tpu.dimension_semantics<arbitrary>], iteration_bounds = array<i64: 3, 1>, scalar_prefetch = 0 : i64, scratch_operands = 1 : i64, tpu.core_type = #tpu.core_type<tc>, window_params = [{transform_indices = @transform_0, window_bounds = array<i64: 8, 32>}, {pipeline_mode = #tpu.pipeline_mode<synchronous>, transform_indices = @transform_1, window_bounds = array<i64: 32, 16>}, {pipeline_mode = #tpu.pipeline_mode<synchronous>, transform_indices = @transform_2, window_bounds = array<i64: 1, 16>}, {pipeline_mode = #tpu.pipeline_mode<synchronous>, transform_indices = @transform_3, window_bounds = array<i64: 16, 2>}, {pipeline_mode = #tpu.pipeline_mode<synchronous>, transform_indices = @transform_4, window_bounds = array<i64: 1, 2>}, {transform_indices = @transform_5, window_bounds = array<i64: 8, 2>}]} {
    %c0_i32 = arith.constant 0 : i32
    %0 = arith.cmpi eq, %arg1, %c0_i32 : i32
    %1 = arith.extui %0 : i1 to i32
    %c0_i32_0 = arith.constant 0 : i32
    %2 = arith.cmpi ne, %1, %c0_i32_0 : i32
    scf.if %2 {
      %cst_10 = arith.constant 0.000000e+00 : f32
      %12 = vector.broadcast %cst_10 : f32 to vector<8x16xf32>
      %c0_11 = arith.constant 0 : index
      %c0_12 = arith.constant 0 : index
      %13 = vector.load %arg8[%c0_11, %c0_12] : memref<8x16xf32, #tpu.memory_space<vmem>>, vector<8x16xf32>
      tpu.vector_store %arg8[%c0_11, %c0_12], %12 {strides = array<i32>} : memref<8x16xf32, #tpu.memory_space<vmem>>, vector<8x16xf32>,
    } else {
    }
    %c0 = arith.constant 0 : index
    %c0_1 = arith.constant 0 : index
    %3 = vector.load %arg8[%c0, %c0_1] : memref<8x16xf32, #tpu.memory_space<vmem>>, vector<8x16xf32>
    %c0_2 = arith.constant 0 : index
    %c0_3 = arith.constant 0 : index
    %4 = vector.load %arg2[%c0_2, %c0_3] : memref<8x32xbf16, #tpu.memory_space<vmem>>, vector<8x32xbf16>
    %c0_4 = arith.constant 0 : index
    %c0_5 = arith.constant 0 : index
    %5 = vector.load %arg3[%c0_4, %c0_5] : memref<32x16xbf16, #tpu.memory_space<vmem>>, vector<32x16xbf16>
    %cst = arith.constant dense<0.000000e+00> : vector<8x16xf32>
    %6 = tpu.matmul %4, %5, %cst {dimension_numbers = #tpu.dot_dimension_numbers<[1], [0], [0], [1], [0, 0, 1, 1], [], []>} : vector<8x32xbf16>, vector<32x16xbf16>, vector<8x16xf32> -> vector<8x16xf32>
    %7 = arith.addf %3, %6 : vector<8x16xf32>
    %c0_6 = arith.constant 0 : index
    %c0_7 = arith.constant 0 : index
    %8 = vector.load %arg8[%c0_6, %c0_7] : memref<8x16xf32, #tpu.memory_space<vmem>>, vector<8x16xf32>
    tpu.vector_store %arg8[%c0_6, %c0_7], %7 {strides = array<i32>} : memref<8x16xf32, #tpu.memory_space<vmem>>, vector<8x16xf32>,
    %c0_i32_8 = arith.constant 0 : i32
    %9 = arith.cmpi eq, %arg1, %c0_i32_8 : i32
    %10 = arith.extui %9 : i1 to i32
    %c0_i32_9 = arith.constant 0 : i32
    %11 = arith.cmpi ne, %10, %c0_i32_9 : i32
    scf.if %11 {
      %c0_10 = arith.constant 0 : index
      %c0_11 = arith.constant 0 : index
      %12 = vector.load %arg8[%c0_10, %c0_11] : memref<8x16xf32, #tpu.memory_space<vmem>>, vector<8x16xf32>
      %c0_12 = arith.constant 0 : index
      %c0_13 = arith.constant 0 : index
      %13 = vector.load %arg4[%c0_12, %c0_13] : memref<1x16xf32, #tpu.memory_space<vmem>>, vector<1x16xf32>
      %14 = vector.broadcast %13 : vector<1x16xf32> to vector<8x16xf32>
      %15 = arith.addf %12, %14 : vector<8x16xf32>
      %16 = math.tanh %15 : vector<8x16xf32>
      %17 = arith.truncf %16 : vector<8x16xf32> to vector<8x16xbf16>
      %c0_14 = arith.constant 0 : index
      %c0_15 = arith.constant 0 : index
      %18 = vector.load %arg5[%c0_14, %c0_15] : memref<16x2xbf16, #tpu.memory_space<vmem>>, vector<16x2xbf16>
      %cst_16 = arith.constant dense<0.000000e+00> : vector<8x2xf32>
      %19 = tpu.matmul %17, %18, %cst_16 {dimension_numbers = #tpu.dot_dimension_numbers<[1], [0], [0], [1], [0, 0, 1, 1], [], []>} : vector<8x16xbf16>, vector<16x2xbf16>, vector<8x2xf32> -> vector<8x2xf32>
      %c0_17 = arith.constant 0 : index
      %c0_18 = arith.constant 0 : index
      %20 = vector.load %arg6[%c0_17, %c0_18] : memref<1x2xf32, #tpu.memory_space<vmem>>, vector<1x2xf32>
      %21 = vector.broadcast %20 : vector<1x2xf32> to vector<8x2xf32>
      %22 = arith.addf %19, %21 : vector<8x2xf32>
      %c0_19 = arith.constant 0 : index
      %c0_20 = arith.constant 0 : index
      %23 = vector.load %arg7[%c0_19, %c0_20] : memref<8x2xf32, #tpu.memory_space<vmem>>, vector<8x2xf32>
      tpu.vector_store %arg7[%c0_19, %c0_20], %22 {strides = array<i32>} : memref<8x2xf32, #tpu.memory_space<vmem>>, vector<8x2xf32>,
    } else {
    }
    return
  }
  func.func @transform_0(%arg0: i32, %arg1: i32) -> (i32, i32) {
    %c0_i32 = arith.constant 0 : i32
    return %arg0, %arg1 : i32, i32
  }
  func.func @transform_1(%arg0: i32, %arg1: i32) -> (i32, i32) {
    %c0_i32 = arith.constant 0 : i32
    %c0_i32_0 = arith.constant 0 : i32
    return %arg1, %c0_i32 : i32, i32
  }
  func.func @transform_2(%arg0: i32, %arg1: i32) -> (i32, i32) {
    %c0_i32 = arith.constant 0 : i32
    %c0_i32_0 = arith.constant 0 : i32
    %c0_i32_1 = arith.constant 0 : i32
    return %c0_i32, %c0_i32_0 : i32, i32
  }
  func.func @transform_3(%arg0: i32, %arg1: i32) -> (i32, i32) {
    %c0_i32 = arith.constant 0 : i32
    %c0_i32_0 = arith.constant 0 : i32
    %c0_i32_1 = arith.constant 0 : i32
    return %c0_i32, %c0_i32_0 : i32, i32
  }
  func.func @transform_4(%arg0: i32, %arg1: i32) -> (i32, i32) {
    %c0_i32 = arith.constant 0 : i32
    %c0_i32_0 = arith.constant 0 : i32
    %c0_i32_1 = arith.constant 0 : i32
    return %c0_i32, %c0_i32_0 : i32, i32
  }
  func.func @transform_5(%arg0: i32, %arg1: i32) -> (i32, i32) {
    %c0_i32 = arith.constant 0 : i32
    %c0_i32_0 = arith.constant 0 : i32
    return %arg0, %c0_i32 : i32, i32
  }
}

</mosaic_0001>

<bundles_post_ra>
// kernel: tpu_custom_call.1
= control target key start
LH: loop header
LB: loop body
LE: loop exit
PB: predicated region body
PF: predicated region fallthrough
CT: control target
= control target key end

     0   :  { %s614_s18 = smov 0   ;;  %s616_s19 = smov 0   ;;  %s665_s0 = inlined_call_operand.vmem [shape: bf16[20,32], index: 0, kind: input, shape index: {}]   ;;  %s666_s1 = inlined_call_operand.vmem [shape: bf16[32,16], index: 1, kind: input, shape index: {}]   ;;  %s667_s2 = inlined_call_operand.vmem [shape: f32[1,16], index: 2, kind: input, shape index: {}]   ;;  %s668_s3 = inlined_call_operand.vmem [shape: bf16[16,2], index: 3, kind: input, shape index: {}]   ;;  %s669_s4 = inlined_call_operand.vmem [shape: f32[1,2], index: 4, kind: input, shape index: {}]   ;;  %s670_s5 = inlined_call_operand.vmem [shape: f32[20,2], index: 5, kind: output, shape index: {}]  }
   0x1   :  { %s618_s20 = smov 0  }
   0x2 LB: > { %s27_s21 = sadd.s32 1, %s576_s19  ;;  %p496_p0 = scmp.ge.s32.totalorder %s580_s20, 1  ;;  %s580_s20 = sphi %s618_s20, %s15_s20   ;;  %s576_s19 = sphi %s616_s19, %s672_s19   ;;  %s572_s18 = sphi %s614_s18, %s671_s18  }
   0x3   : > { %p29_p1 = scmp.ge.s32.totalorder %s27_s21, 3  ;;  %p214_p2 = scmp.lt.s32.totalorder %s580_s20, 4 }
   0x5   : > { %s674_s21 = smov (%p29_p1, %s27_s21), 0  ;;  %p215_p3 = pnand %p496_p0, %p214_p2 }
   0x6   : > { %v553_v0 = vld [vmem:[%s666_s1] sm:$0xff] (!%p215_p3)   ;;  %v582_v1 = vmov (!%p215_p3), 0.0   ;;  %v554_v2 = vld [vmem:[%s666_s1 + $0x8] sm:$0xff] (!%p215_p3)   ;;  %vm583_vm0 = vmmov (!%p215_p3), 0   ;;  %p248_p4 = scmp.lt.s32.totalorder (!%p215_p3), %s572_s18, 2  ;;  %vm270_vm1 = vcmask (!%p215_p3), 130048  }
   0x7   : > { %218 = sbr.rel (%p215_p3) target bundleno = 470 (0x1d6), region = 40  ;;  %513 = vmatprep.subr.bf16.mxu0 (!%p215_p3), %v582_v1  ;;  %521 = vmatprep.subr.bf16.mxu1 (!%p215_p3), %v582_v1  ;;  %271 = vst.msk [vmem:[#allocation2] sm:$0xff] (!%p215_p3), %vm270_vm1, %v582_v1  ;;  %vm290_vm2 = vcmask (!%p215_p3), 261120   ;;  %v555_v4 = vld [vmem:[%s668_s3] sm:$0xff] (!%p215_p3)   ;;  %vm409_vm3 = vcmask (!%p215_p3), 15360  }
   0x8   : > { %514 = vmatpush3.bf16.msra.mxu0 (!%p215_p3), %v553_v0  ;;  %517 = vmatprep.mubr.msk.bf16.mxu0 (!%p215_p3), %vm583_vm0, %v582_v1  ;;  %v502_v11 = vld [vmem:[%s667_s2] ss:$0 sm:$0xff] (!%p215_p3) }
   0x9   : > { %515 = vmatprep.subr.bf16.mxu0 (!%p215_p3), %v582_v1  ;;  %523 = vmatprep.mubr.msk.bf16.mxu1 (!%p215_p3), %vm583_vm0, %v582_v1  ;;  %v503_v16 = vld [vmem:[%s669_s4] ss:$0 sm:$0xff] (!%p215_p3) }
   0xa   : > { %522 = vmatpush3.bf16.msra.mxu1 (!%p215_p3), %v555_v4 }
   0xc   : > { %516 = vmatpush3.bf16.msra.mxu0 (!%p215_p3), %v554_v2 }
   0xe   : > { %s676_s18 = smov (!%p248_p4, %s572_s18), 2  ;;  %v272_v5 = vld [vmem:[#allocation2] sm:$0xff] }
   0xf   : > { %s497_s26 = sshll.u32 %s676_s18, 2  ;;  %s498_s9 = sshll.u32 %s676_s18, 3 }
  0x10   : > { %s254_s29 = scalar_lea.vmem %s665_s0, %s497_s26  ;;  %s264_s14 = scalar_lea.vmem %s670_s5, %s498_s9 }
  0x11   : > { %v273_v3 = vld [vmem:[%s254_s29] sm:$0xf] }
  0x12   : > { %518 = vmatmul.mubr.msk.bf16.vlgmr.msra.gmra.mrb[0].mxu0 %vm290_vm2, %v273_v3 }
  0xe5   : > { %v328_v6 = vpop.f32.mrb[0].mxu0 }
  0xe6   : > { %v334_v7 = vadd.f32 %v328_v6, %v272_v5  ;;  %v519_v8 = vpop.f32.mrb[1].mxu0 }
  0xe7   : > { %v331_v9 = vpop.f32.mrb[2].mxu0 }
  0xe8   : > { %336 = vst.msk [vmem:[#allocation2] sm:$0xff] %vm270_vm1, %v334_v7  ;;  %v520_v10 = vpop.f32.mrb[3].mxu0 }
  0xef   : > { %v340_v12 = vld [vmem:[#allocation2] sm:$0xff] }
  0xf0   : > { %v348_v13 = vadd.f32 %v502_v11, %v340_v12 }
  0xf2   : > { %556 = vtanh.f32 %v348_v13 }
  0xfc   : > { %v557_v14 = vpop.eup %556 }
  0xfd   : > { %v350_v15 = vpack.c.bf16 %v557_v14, %v557_v14 }
  0xff   : > { %524 = vmatmul.mubr.msk.bf16.vlgmr.msra.gmra.mrb[0].mxu1 %vm270_vm1, %v350_v15 }
 0x1d2   : > { %v403_v17 = vpop.f32.mrb[0].mxu1 }
 0x1d3   : > { %v404_v18 = vadd.f32 %v503_v16, %v403_v17  ;;  %v525_v19 = vpop.f32.mrb[1].mxu1 }
 0x1d4   : > { %v406_v20 = vpop.f32.mrb[2].mxu1 }
 0x1d5   : > { %410 = vst.msk [vmem:[%s264_s14] sm:$0xff] %vm409_vm3, %v404_v18  ;;  %v526_v21 = vpop.f32.mrb[3].mxu1 }
 0x1d6 PF: > { %s15_s20 = sadd.s32 1, %s580_s20   ;;  %s671_s18 = smov %s576_s19 }
 0x1d7   : > { %p12_p5 = scmp.ge.s32.totalorder %s15_s20, 5   ;;  %s672_s19 = smov %s674_s21 }
 0x1d9   :  { %14 = sbr.rel (!%p12_p5) target bundleno = 2 (0x2), region = 81 }

</bundles_post_ra>
